<compile_context>
chip_gen: v6e
topology: v6e:2x2x1
jax: 0.10.0
libtpu: 0.0.40
codegen_flags: <defaults>
</compile_context>

<pallas_src>
import functools

import jax
import jax.numpy as jnp
from jax.experimental import pallas as pl
from jax.experimental.pallas import tpu as pltpu


# ----------------------------- Pallas kernel ------------------------------ #

def _encoder_kernel(*refs, num_convs, compute_dtype):
    """refs = (a_hat, x, w0, b0, ..., w_{L-2}, b_{L-2}, w_head, b_head, out)."""
    a_ref, x_ref = refs[0], refs[1]
    o_ref = refs[-1]
    prm = refs[2:-1]

    a = a_ref[...]          # (N, N)   compute_dtype
    h = x_ref[...]          # (N, Cin) compute_dtype

    def gcn(h_cd, w_cd, b_f32, relu):
        # Always A @ (H @ W): for Cin, Cout <= MXU width the big A-matmul costs
        # the same MXU pass count for either association, and this ordering
        # keeps the only recast to the small (N, Cout) intermediate.
        # (Only if channels ever exceed the MXU width would comparing
        # ceil(Cin/width) vs ceil(Cout/width) matter.)
        t = jnp.dot(h_cd, w_cd, preferred_element_type=jnp.float32)
        y = jnp.dot(a, t.astype(compute_dtype),
                    preferred_element_type=jnp.float32)
        y = y + b_f32       # bias broadcast over nodes (VPU, f32)
        if relu:
            y = jnp.maximum(y, 0.0)
        return y

    # Conv stack (unrolled in Python; activations never leave the core).
    for i in range(num_convs):
        w = prm[2 * i][...]
        b = prm[2 * i + 1][...]
        h = gcn(h, w, b, relu=True).astype(compute_dtype)

    # Fused, lane-padded mu/logstd head (no ReLU).
    out = gcn(h, prm[-2][...], prm[-1][...], relu=False)
    o_ref[...] = out.astype(o_ref.dtype)


# ------------------------------ wrapper ------------------------------------ #

def _round_up(x, m):
    return ((x + m - 1) // m) * m


def _default_vmem_limit_bytes():
    """~85% of per-core physical VMEM; 56 MiB floor is safe on every gen."""
    try:
        cap = int(pltpu.get_tpu_info().vmem_capacity_bytes)
        return max(32 << 20, min(int(cap * 0.85), 110 << 20))
    except Exception:
        return 56 << 20


def graph_encoder_apply(a_hat, x, params, *, compute_dtype=jnp.bfloat16,
                        vmem_limit_bytes=None):
    """Single fused pallas_call for the full encoder. Returns (mu, logstd)."""
    convs = params["convs"]
    w_mu, b_mu = params["mu"]
    w_ls, b_ls = params["logstd"]
    n = a_hat.shape[0]
    hidden = w_mu.shape[0]
    c_out = w_mu.shape[1]

    # Fuse the two heads into one matmul and zero-pad the output channels to a
    # multiple of 128 lanes -> the kernel's single HBM store is unmasked /
    # lane-dense. Padded columns compute exact zeros and are sliced off below.
    head_cols = max(128, _round_up(2 * c_out, 128))
    w_head = jnp.zeros((hidden, head_cols), jnp.float32)
    w_head = w_head.at[:, :c_out].set(w_mu).at[:, c_out:2 * c_out].set(w_ls)
    b_head = jnp.zeros((head_cols,), jnp.float32)
    b_head = b_head.at[:c_out].set(b_mu).at[c_out:2 * c_out].set(b_ls)

    inputs = [a_hat.astype(compute_dtype), x.astype(compute_dtype)]
    for w, b in convs:
        inputs.append(w.astype(compute_dtype))
        inputs.append(b.reshape(1, -1).astype(jnp.float32))
    inputs.append(w_head.astype(compute_dtype))
    inputs.append(b_head.reshape(1, -1).astype(jnp.float32))

    # grid=() resident path: memory_space-only specs, no pipeline
    # double-buffering (A_hat lives in VMEM exactly once).
    vmem_spec = pl.BlockSpec(memory_space=pltpu.MemorySpace.VMEM)
    in_specs = [vmem_spec] * len(inputs)

    # Cost estimate: per layer 2*N*Cin*Cout (H@W) + 2*N^2*Cout (A@t).
    flops = 0
    cin = x.shape[1]
    for w, _ in convs:
        cout = w.shape[1]
        flops += 2 * n * cin * cout + 2 * n * n * cout
        cin = cout
    flops += 2 * n * cin * head_cols + 2 * n * n * head_cols
    bytes_accessed = (sum(int(inp.size) * inp.dtype.itemsize for inp in inputs)
                      + n * head_cols * 4)

    if vmem_limit_bytes is None:
        vmem_limit_bytes = _default_vmem_limit_bytes()

    out = pl.pallas_call(
        functools.partial(_encoder_kernel, num_convs=len(convs),
                          compute_dtype=compute_dtype),
        out_shape=jax.ShapeDtypeStruct((n, head_cols), jnp.float32),
        in_specs=in_specs,
        out_specs=vmem_spec,
        compiler_params=pltpu.CompilerParams(
            vmem_limit_bytes=int(vmem_limit_bytes)),
        cost_estimate=pl.CostEstimate(flops=int(flops), transcendentals=0,
                                      bytes_accessed=int(bytes_accessed)),
    )(*inputs)

    return out[:, :c_out], out[:, c_out:2 * c_out]


# ------------------------------ JAX glue ---------------------------------- #

def build_normalized_adj(edge_index, num_nodes, edge_weight=None,
                         dtype=jnp.float32):
    """Dense GCN-normalized adjacency: D^-1/2 (A + I) D^-1/2 (PyG gcn_norm).

    Self-loops are only added for nodes that do not already have one
    (add_remaining_self_loops semantics); existing self-loop weights are kept.
    Built/cast directly to `dtype` so the N^2 array crosses HBM at that width.
    """
    src = edge_index[0]
    dst = edge_index[1]
    if edge_weight is None:
        edge_weight = jnp.ones(src.shape[0], dtype=jnp.float32)
    a = jnp.zeros((num_nodes, num_nodes), jnp.float32).at[dst, src].add(edge_weight)
    diag = jnp.diagonal(a)
    a = a + jnp.diag(jnp.where(diag == 0.0, 1.0, 0.0))
    deg = a.sum(axis=1)
    dinv = jnp.where(deg > 0, jax.lax.rsqrt(deg), 0.0)
    return (dinv[:, None] * a * dinv[None, :]).astype(dtype)


def _glorot(key, fan_in, fan_out):
    limit = jnp.sqrt(6.0 / (fan_in + fan_out))
    return jax.random.uniform(key, (fan_in, fan_out), jnp.float32, -limit, limit)


def init_params(key, in_channels, hidden_channels, out_channels, layers):
    """GCNConv weights (glorot) and biases (zeros), matching the module."""
    dims = []
    for i in range(layers - 1):
        cin = in_channels if i == 0 else hidden_channels
        dims.append((cin, hidden_channels))
    keys = jax.random.split(key, len(dims) + 2)
    convs = [(_glorot(keys[i], cin, cout), jnp.zeros((cout,), jnp.float32))
             for i, (cin, cout) in enumerate(dims)]
    mu = (_glorot(keys[-2], hidden_channels, out_channels),
          jnp.zeros((out_channels,), jnp.float32))
    logstd = (_glorot(keys[-1], hidden_channels, out_channels),
              jnp.zeros((out_channels,), jnp.float32))
    return {"convs": convs, "mu": mu, "logstd": logstd}


def graph_encoder_forward(params, x, edge_index, edge_weight=None,
                          compute_dtype=jnp.bfloat16):
    """Forward pass of GraphEncoder (batch_norm=False)."""
    n = x.shape[0]
    a_hat = build_normalized_adj(edge_index, n, edge_weight, dtype=compute_dtype)
    return graph_encoder_apply(a_hat, x, params, compute_dtype=compute_dtype)


def _reference_forward(params, x, a_hat):
    """Pure-JAX f32 reference for validation."""
    h = x
    for w, b in params["convs"]:
        h = jnp.maximum(a_hat @ (h @ w) + b, 0.0)
    mu = a_hat @ (h @ params["mu"][0]) + params["mu"][1]
    logstd = a_hat @ (h @ params["logstd"][0]) + params["logstd"][1]
    return mu, logstd


# ------------------------------- main -------------------------------------- #

if __name__ == "__main__":
    N, C_IN, HIDDEN, C_OUT, LAYERS = 16, 4, 32, 16, 4

    key = jax.random.PRNGKey(0)
    kx, kp = jax.random.split(key)

    # Node features [N, C_in]
    x = jax.random.normal(kx, (N, C_IN), dtype=jnp.float32)

    # Deterministic graph: undirected ring + chords (both edge directions).
    src = jnp.arange(N, dtype=jnp.int32)
    ring_dst = (src + 1) % N
    chord_dst = (src + 3) % N
    edge_index = jnp.concatenate(
        [
            jnp.stack([src, ring_dst]),
            jnp.stack([ring_dst, src]),
            jnp.stack([src, chord_dst]),
            jnp.stack([chord_dst, src]),
        ],
        axis=1,
    )

    params = init_params(kp, C_IN, HIDDEN, C_OUT, LAYERS)

    fwd = jax.jit(graph_encoder_forward)
    mu, logstd = fwd(params, x, edge_index)
    jax.block_until_ready((mu, logstd))
    assert mu.shape == (N, C_OUT) and logstd.shape == (N, C_OUT)

    # Validate the fused bf16 kernel against the f32 pure-JAX reference.
    a_hat_f32 = build_normalized_adj(edge_index, N, dtype=jnp.float32)
    mu_ref, logstd_ref = _reference_forward(params, x, a_hat_f32)
    assert bool(jnp.all(jnp.isfinite(mu)) & jnp.all(jnp.isfinite(logstd)))
    assert jnp.allclose(mu, mu_ref, atol=5e-2, rtol=5e-2)
    assert jnp.allclose(logstd, logstd_ref, atol=5e-2, rtol=5e-2)

    print("KERNEL_OK")
</pallas_src>

<mosaic_0001>
module attributes {stable_mosaic.version = 11 : i64} {
  func.func private @main(%arg0: i32) attributes {dimension_semantics = [#tpu.dimension_semantics<core_parallel>], iteration_bounds = array<i64: 2>, tpu.core_type = #tpu.core_type<sc_scalar_subcore>, window_params = []} {
    return
  }
}

module attributes {stable_mosaic.version = 11 : i64} {
  func.func private @main(%arg0: i32) attributes {dimension_semantics = [#tpu.dimension_semantics<core_parallel>], iteration_bounds = array<i64: 2>, tpu.core_type = #tpu.core_type<sc_scalar_subcore>, window_params = []} {
    return
  }
}

module attributes {stable_mosaic.version = 11 : i64} {
  func.func @_encoder_kernel(%arg0: memref<16x16xbf16, #tpu.memory_space<vmem>>, %arg1: memref<16x4xbf16, #tpu.memory_space<vmem>>, %arg2: memref<4x32xbf16, #tpu.memory_space<vmem>>, %arg3: memref<1x32xf32, #tpu.memory_space<vmem>>, %arg4: memref<32x32xbf16, #tpu.memory_space<vmem>>, %arg5: memref<1x32xf32, #tpu.memory_space<vmem>>, %arg6: memref<32x32xbf16, #tpu.memory_space<vmem>>, %arg7: memref<1x32xf32, #tpu.memory_space<vmem>>, %arg8: memref<32x128xbf16, #tpu.memory_space<vmem>>, %arg9: memref<1x128xf32, #tpu.memory_space<vmem>>, %arg10: memref<16x128xf32, #tpu.memory_space<vmem>>) attributes {dimension_semantics = [], scalar_prefetch = 0 : i64, scratch_operands = 0 : i64, tpu.core_type = #tpu.core_type<tc>} {
    %c0 = arith.constant 0 : index
    %c0_0 = arith.constant 0 : index
    %0 = vector.load %arg0[%c0, %c0_0] : memref<16x16xbf16, #tpu.memory_space<vmem>>, vector<16x16xbf16>
    %c0_1 = arith.constant 0 : index
    %c0_2 = arith.constant 0 : index
    %1 = vector.load %arg1[%c0_1, %c0_2] : memref<16x4xbf16, #tpu.memory_space<vmem>>, vector<16x4xbf16>
    %c0_3 = arith.constant 0 : index
    %c0_4 = arith.constant 0 : index
    %2 = vector.load %arg2[%c0_3, %c0_4] : memref<4x32xbf16, #tpu.memory_space<vmem>>, vector<4x32xbf16>
    %c0_5 = arith.constant 0 : index
    %c0_6 = arith.constant 0 : index
    %3 = vector.load %arg3[%c0_5, %c0_6] : memref<1x32xf32, #tpu.memory_space<vmem>>, vector<1x32xf32>
    %cst = arith.constant dense<0.000000e+00> : vector<16x32xf32>
    %4 = tpu.matmul %1, %2, %cst {dimension_numbers = #tpu.dot_dimension_numbers<[1], [0], [0], [1], [0, 0, 1, 1], [], []>} : vector<16x4xbf16>, vector<4x32xbf16>, vector<16x32xf32> -> vector<16x32xf32>
    %5 = arith.truncf %4 : vector<16x32xf32> to vector<16x32xbf16>
    %cst_7 = arith.constant dense<0.000000e+00> : vector<16x32xf32>
    %6 = tpu.matmul %0, %5, %cst_7 {dimension_numbers = #tpu.dot_dimension_numbers<[1], [0], [0], [1], [0, 0, 1, 1], [], []>} : vector<16x16xbf16>, vector<16x32xbf16>, vector<16x32xf32> -> vector<16x32xf32>
    %7 = vector.broadcast %3 : vector<1x32xf32> to vector<16x32xf32>
    %8 = arith.addf %6, %7 : vector<16x32xf32>
    %cst_8 = arith.constant 0.000000e+00 : f32
    %9 = vector.broadcast %cst_8 : f32 to vector<16x32xf32>
    %10 = arith.maximumf %8, %9 : vector<16x32xf32>
    %11 = arith.truncf %10 : vector<16x32xf32> to vector<16x32xbf16>
    %c0_9 = arith.constant 0 : index
    %c0_10 = arith.constant 0 : index
    %12 = vector.load %arg4[%c0_9, %c0_10] : memref<32x32xbf16, #tpu.memory_space<vmem>>, vector<32x32xbf16>
    %c0_11 = arith.constant 0 : index
    %c0_12 = arith.constant 0 : index
    %13 = vector.load %arg5[%c0_11, %c0_12] : memref<1x32xf32, #tpu.memory_space<vmem>>, vector<1x32xf32>
    %cst_13 = arith.constant dense<0.000000e+00> : vector<16x32xf32>
    %14 = tpu.matmul %11, %12, %cst_13 {dimension_numbers = #tpu.dot_dimension_numbers<[1], [0], [0], [1], [0, 0, 1, 1], [], []>} : vector<16x32xbf16>, vector<32x32xbf16>, vector<16x32xf32> -> vector<16x32xf32>
    %15 = arith.truncf %14 : vector<16x32xf32> to vector<16x32xbf16>
    %cst_14 = arith.constant dense<0.000000e+00> : vector<16x32xf32>
    %16 = tpu.matmul %0, %15, %cst_14 {dimension_numbers = #tpu.dot_dimension_numbers<[1], [0], [0], [1], [0, 0, 1, 1], [], []>} : vector<16x16xbf16>, vector<16x32xbf16>, vector<16x32xf32> -> vector<16x32xf32>
    %17 = vector.broadcast %13 : vector<1x32xf32> to vector<16x32xf32>
    %18 = arith.addf %16, %17 : vector<16x32xf32>
    %cst_15 = arith.constant 0.000000e+00 : f32
    %19 = vector.broadcast %cst_15 : f32 to vector<16x32xf32>
    %20 = arith.maximumf %18, %19 : vector<16x32xf32>
    %21 = arith.truncf %20 : vector<16x32xf32> to vector<16x32xbf16>
    %c0_16 = arith.constant 0 : index
    %c0_17 = arith.constant 0 : index
    %22 = vector.load %arg6[%c0_16, %c0_17] : memref<32x32xbf16, #tpu.memory_space<vmem>>, vector<32x32xbf16>
    %c0_18 = arith.constant 0 : index
    %c0_19 = arith.constant 0 : index
    %23 = vector.load %arg7[%c0_18, %c0_19] : memref<1x32xf32, #tpu.memory_space<vmem>>, vector<1x32xf32>
    %cst_20 = arith.constant dense<0.000000e+00> : vector<16x32xf32>
    %24 = tpu.matmul %21, %22, %cst_20 {dimension_numbers = #tpu.dot_dimension_numbers<[1], [0], [0], [1], [0, 0, 1, 1], [], []>} : vector<16x32xbf16>, vector<32x32xbf16>, vector<16x32xf32> -> vector<16x32xf32>
    %25 = arith.truncf %24 : vector<16x32xf32> to vector<16x32xbf16>
    %cst_21 = arith.constant dense<0.000000e+00> : vector<16x32xf32>
    %26 = tpu.matmul %0, %25, %cst_21 {dimension_numbers = #tpu.dot_dimension_numbers<[1], [0], [0], [1], [0, 0, 1, 1], [], []>} : vector<16x16xbf16>, vector<16x32xbf16>, vector<16x32xf32> -> vector<16x32xf32>
    %27 = vector.broadcast %23 : vector<1x32xf32> to vector<16x32xf32>
    %28 = arith.addf %26, %27 : vector<16x32xf32>
    %cst_22 = arith.constant 0.000000e+00 : f32
    %29 = vector.broadcast %cst_22 : f32 to vector<16x32xf32>
    %30 = arith.maximumf %28, %29 : vector<16x32xf32>
    %31 = arith.truncf %30 : vector<16x32xf32> to vector<16x32xbf16>
    %c0_23 = arith.constant 0 : index
    %c0_24 = arith.constant 0 : index
    %32 = vector.load %arg8[%c0_23, %c0_24] : memref<32x128xbf16, #tpu.memory_space<vmem>>, vector<32x128xbf16>
    %c0_25 = arith.constant 0 : index
    %c0_26 = arith.constant 0 : index
    %33 = vector.load %arg9[%c0_25, %c0_26] : memref<1x128xf32, #tpu.memory_space<vmem>>, vector<1x128xf32>
    %cst_27 = arith.constant dense<0.000000e+00> : vector<16x128xf32>
    %34 = tpu.matmul %31, %32, %cst_27 {dimension_numbers = #tpu.dot_dimension_numbers<[1], [0], [0], [1], [0, 0, 1, 1], [], []>} : vector<16x32xbf16>, vector<32x128xbf16>, vector<16x128xf32> -> vector<16x128xf32>
    %35 = arith.truncf %34 : vector<16x128xf32> to vector<16x128xbf16>
    %cst_28 = arith.constant dense<0.000000e+00> : vector<16x128xf32>
    %36 = tpu.matmul %0, %35, %cst_28 {dimension_numbers = #tpu.dot_dimension_numbers<[1], [0], [0], [1], [0, 0, 1, 1], [], []>} : vector<16x16xbf16>, vector<16x128xbf16>, vector<16x128xf32> -> vector<16x128xf32>
    %37 = vector.broadcast %33 : vector<1x128xf32> to vector<16x128xf32>
    %38 = arith.addf %36, %37 : vector<16x128xf32>
    %c0_29 = arith.constant 0 : index
    %c0_30 = arith.constant 0 : index
    %39 = vector.load %arg10[%c0_29, %c0_30] : memref<16x128xf32, #tpu.memory_space<vmem>>, vector<16x128xf32>
    tpu.vector_store %arg10[%c0_29, %c0_30], %38 {strides = array<i32>} : memref<16x128xf32, #tpu.memory_space<vmem>>, vector<16x128xf32>,
    return
  }
}

</mosaic_0001>

<bundles_post_ra>
// kernel: graph_encoder_forward.1
= control target key start
LH: loop header
LB: loop body
LE: loop exit
PB: predicated region body
PF: predicated region fallthrough
CT: control target
= control target key end

     0   :  { %vm51_vm0 = vcmask 1041408   ;;  %v599_v0 = vmov 0.0   ;;  %vm600_vm1 = vmmov 0   ;;  %vm47_vm2 = vcmask 31744   ;;  %s741_s2 = inlined_call_operand.vmem [shape: bf16[4,32], index: 2, kind: input, shape index: {}]   ;;  %s742_s1 = inlined_call_operand.vmem [shape: bf16[16,4], index: 1, kind: input, shape index: {}]   ;;  %s743_s0 = inlined_call_operand.vmem [shape: bf16[16,16], index: 0, kind: input, shape index: {}]   ;;  %s744_s4 = inlined_call_operand.vmem [shape: bf16[32,32], index: 4, kind: input, shape index: {}]   ;;  %s745_s3 = inlined_call_operand.vmem [shape: f32[1,32], index: 3, kind: input, shape index: {}]   ;;  %s746_s6 = inlined_call_operand.vmem [shape: bf16[32,32], index: 6, kind: input, shape index: {}]   ;;  %s747_s5 = inlined_call_operand.vmem [shape: f32[1,32], index: 5, kind: input, shape index: {}]   ;;  %s748_s8 = inlined_call_operand.vmem [shape: bf16[32,128], index: 8, kind: input, shape index: {}]   ;;  %s749_s7 = inlined_call_operand.vmem [shape: f32[1,32], index: 7, kind: input, shape index: {}]   ;;  %s750_s9 = inlined_call_operand.vmem [shape: f32[1,128], index: 9, kind: input, shape index: {}]   ;;  %s751_s10 = inlined_call_operand.vmem [shape: f32[16,128], index: 10, kind: output, shape index: {}]  }
   0x1   :  { %535 = vmatprep.subr.bf16.mxu0 %v599_v0  ;;  %v40_v1 = vld [vmem:[%s741_s2] sm:$0x3]  ;;  %537 = vmatprep.mubr.msk.bf16.mxu0 %vm600_vm1, %v599_v0  ;;  %vm108_vm3 = vcmask 130048   ;;  %v593_v10 = vld [vmem:[%s744_s4 + $0x8] sm:$0xff]   ;;  %vm173_vm4 = vcmask 261120  }
   0x2   :  { %v53_v2 = vsel %vm51_vm0, %v40_v1, 0  ;;  %v591_v3 = vld [vmem:[%s742_s1] sm:$0xff]   ;;  %541 = vmatprep.subr.bf16.mxu1 %v599_v0  ;;  %543 = vmatprep.mubr.msk.bf16.mxu1 %vm600_vm1, %v599_v0  ;;  %v595_v27 = vld [vmem:[%s746_s6 + $0x8] sm:$0xff]  }
   0x3   :  { %536 = vmatpush3.bf16.msra.mxu0 %v53_v2  ;;  %v674_v9 = vld [vmem:[%s743_s0] sm:$0xff]   ;;  %v597_v44 = vld [vmem:[%s748_s8 + $0x8] sm:$0xff]  }
   0x4   :  { %547 = vmatprep.subr.bf16.mxu0 %v599_v0  ;;  %v594_v11 = vld [vmem:[%s744_s4] sm:$0xff]  }
   0x5   :  { %v498_v12 = vld [vmem:[%s745_s3] ss:$0 sm:$0xff] }
   0x6   :  { %538 = vmatmul.mubr.msk.bf16.vlgmr.msra.gmra.mxu0 %vm47_vm2, %v591_v3  ;;  %v596_v28 = vld [vmem:[%s746_s6] sm:$0xff]  }
   0x7   :  { %551 = vmatprep.mubr.msk.bf16.mxu0 %vm600_vm1, %v599_v0  ;;  %548 = vmatpush3.bf16.msra.mxu0 %v593_v10  ;;  %v504_v29 = vld [vmem:[%s747_s5] ss:$0 sm:$0xff] }
   0x8   :  { %549 = vmatprep.subr.bf16.mxu0 %v599_v0  ;;  %v598_v45 = vld [vmem:[%s748_s8] sm:$0xff]  }
   0x9   :  { %v509_v46 = vld [vmem:[%s749_s7] ss:$0 sm:$0xff] }
   0xa   :  { %v514_v61 = vld [vmem:[%s750_s9] ss:$0 sm:$0xff] }
   0xb   :  { %550 = vmatpush3.bf16.msra.mxu0 %v594_v11 }
   0xc   :  { %561 = vmatprep.subr.bf16.mxu0 %v599_v0 }
  0xc6   :  { %v89_v4 = vpop.f32.mrf.mxu0 }
  0xc8   :  { %v539_v5 = vpop.f32.mrf.mxu0 }
  0xca   :  { %v92_v6 = vpop.f32.mrf.mxu0 }
  0xcb   :  { %v96_v7 = vpack.c.bf16 %v92_v6, %v89_v4 }
  0xcc   :  { %v540_v8 = vpop.f32.mrf.mxu0 }
  0xcd   :  { %542 = vmatpush3.bf16.msra.mxu1 %v96_v7 }
  0xce   :  { %555 = vmatprep.subr.bf16.mxu1 %v599_v0 }
  0xd0   :  { %544 = vmatmul.mubr.msk.bf16.vlgmr.msra.gmra.mxu1 %vm108_vm3, %v674_v9 }
  0xd1   :  { %557 = vmatprep.mubr.msk.bf16.mxu1 %vm600_vm1, %v599_v0 }
 0x190   :  { %v146_v13 = vpop.f32.mrf.mxu1 }
 0x191   :  { %v147_v15 = vadd.f32 %v498_v12, %v146_v13 }
 0x192   :  { %v545_v14 = vpop.f32.mrf.mxu1 }
 0x193   :  { %v153_v19 = vmax.f32 %v147_v15, 0.0 }
 0x194   :  { %v149_v16 = vpop.f32.mrf.mxu1 }
 0x195   :  { %v150_v17 = vadd.f32 %v498_v12, %v149_v16 }
 0x196   :  { %v546_v18 = vpop.f32.mrf.mxu1 }
 0x197   :  { %v154_v20 = vmax.f32 %v150_v17, 0.0 }
 0x199   :  { %v155_v21 = vpack.c.bf16 %v154_v20, %v153_v19 }
 0x19b   :  { %552 = vmatmul.mubr.msk.bf16.vlgmr.msra.gmra.mxu0 %vm173_vm4, %v155_v21 }
 0x19c   :  { %565 = vmatprep.mubr.msk.bf16.mxu0 %vm600_vm1, %v599_v0  ;;  %562 = vmatpush3.bf16.msra.mxu0 %v595_v27 }
 0x19d   :  { %563 = vmatprep.subr.bf16.mxu0 %v599_v0 }
 0x1a0   :  { %564 = vmatpush3.bf16.msra.mxu0 %v596_v28 }
 0x1a1   :  { %575 = vmatprep.subr.bf16.mxu0 %v599_v0 }
 0x25b   :  { %v211_v22 = vpop.f32.mrf.mxu0 }
 0x25d   :  { %v553_v23 = vpop.f32.mrf.mxu0 }
 0x25f   :  { %v214_v24 = vpop.f32.mrf.mxu0 }
 0x260   :  { %v218_v25 = vpack.c.bf16 %v214_v24, %v211_v22 }
 0x261   :  { %v554_v26 = vpop.f32.mrf.mxu0 }
 0x262   :  { %556 = vmatpush3.bf16.msra.mxu1 %v218_v25 }
 0x263   :  { %569 = vmatprep.subr.bf16.mxu1 %v599_v0 }
 0x265   :  { %558 = vmatmul.mubr.msk.bf16.vlgmr.msra.gmra.mxu1 %vm108_vm3, %v674_v9 }
 0x266   :  { %571 = vmatprep.mubr.msk.bf16.mxu1 %vm600_vm1, %v599_v0 }
 0x325   :  { %v259_v30 = vpop.f32.mrf.mxu1 }
 0x326   :  { %v260_v32 = vadd.f32 %v504_v29, %v259_v30 }
 0x327   :  { %v559_v31 = vpop.f32.mrf.mxu1 }
 0x328   :  { %v266_v36 = vmax.f32 %v260_v32, 0.0 }
 0x329   :  { %v262_v33 = vpop.f32.mrf.mxu1 }
 0x32a   :  { %v263_v34 = vadd.f32 %v504_v29, %v262_v33 }
 0x32b   :  { %v560_v35 = vpop.f32.mrf.mxu1 }
 0x32c   :  { %v267_v37 = vmax.f32 %v263_v34, 0.0 }
 0x32e   :  { %v268_v38 = vpack.c.bf16 %v267_v37, %v266_v36 }
 0x330   :  { %566 = vmatmul.mubr.msk.bf16.vlgmr.msra.gmra.mxu0 %vm173_vm4, %v268_v38 }
 0x331   :  { %579 = vmatprep.mubr.msk.bf16.mxu0 %vm600_vm1, %v599_v0  ;;  %576 = vmatpush3.bf16.msra.mxu0 %v597_v44 }
 0x332   :  { %577 = vmatprep.subr.bf16.mxu0 %v599_v0 }
 0x335   :  { %578 = vmatpush3.bf16.msra.mxu0 %v598_v45 }
 0x3f0   :  { %v323_v39 = vpop.f32.mrf.mxu0 }
 0x3f2   :  { %v567_v40 = vpop.f32.mrf.mxu0 }
 0x3f4   :  { %v326_v41 = vpop.f32.mrf.mxu0 }
 0x3f5   :  { %v330_v42 = vpack.c.bf16 %v326_v41, %v323_v39 }
 0x3f6   :  { %v568_v43 = vpop.f32.mrf.mxu0 }
 0x3f7   :  { %570 = vmatpush3.bf16.msra.mxu1 %v330_v42 }
 0x3f8   :  { %583 = vmatprep.subr.bf16.mxu1 %v599_v0 }
 0x3fa   :  { %572 = vmatmul.mubr.msk.bf16.vlgmr.msra.gmra.mxu1 %vm108_vm3, %v674_v9 }
 0x3fb   :  { %585 = vmatprep.mubr.msk.bf16.mxu1 %vm600_vm1, %v599_v0 }
 0x4ba   :  { %v371_v47 = vpop.f32.mrf.mxu1 }
 0x4bb   :  { %v372_v49 = vadd.f32 %v509_v46, %v371_v47 }
 0x4bc   :  { %v573_v48 = vpop.f32.mrf.mxu1 }
 0x4bd   :  { %v378_v53 = vmax.f32 %v372_v49, 0.0 }
 0x4be   :  { %v374_v50 = vpop.f32.mrf.mxu1 }
 0x4bf   :  { %v375_v51 = vadd.f32 %v509_v46, %v374_v50 }
 0x4c0   :  { %v574_v52 = vpop.f32.mrf.mxu1 }
 0x4c1   :  { %v379_v54 = vmax.f32 %v375_v51, 0.0 }
 0x4c3   :  { %v380_v55 = vpack.c.bf16 %v379_v54, %v378_v53 }
 0x4c5   :  { %580 = vmatmul.mubr.msk.bf16.vlgmr.msra.gmra.mxu0 %vm173_vm4, %v380_v55 }
 0x585   :  { %v435_v56 = vpop.f32.mrf.mxu0 }
 0x587   :  { %v581_v57 = vpop.f32.mrf.mxu0 }
 0x589   :  { %v438_v58 = vpop.f32.mrf.mxu0 }
 0x58a   :  { %v442_v59 = vpack.c.bf16 %v438_v58, %v435_v56 }
 0x58b   :  { %v582_v60 = vpop.f32.mrf.mxu0 }
 0x58c   :  { %584 = vmatpush3.bf16.msra.mxu1 %v442_v59 }
 0x58f   :  { %586 = vmatmul.mubr.msk.bf16.vlgmr.msra.gmra.mxu1 %vm108_vm3, %v674_v9 }
 0x64f   :  { %v483_v62 = vpop.f32.mrf.mxu1 }
 0x650   :  { %v484_v63 = vadd.f32 %v514_v61, %v483_v62 }
 0x651   :  { %v587_v0 = vpop.f32.mrf.mxu1 }
 0x652   :  { %490 = vst [vmem:[%s751_s10] sm:$0xff] %v484_v63 }
 0x653   :  { %v486_v1 = vpop.f32.mrf.mxu1 }
 0x654   :  { %v487_v2 = vadd.f32 %v514_v61, %v486_v1 }
 0x655   :  { %v588_v3 = vpop.f32.mrf.mxu1 }
 0x656   :  { %491 = vst [vmem:[%s751_s10 + $0x8] sm:$0xff] %v487_v2 }

</bundles_post_ra>
